<compile_context>
chip_gen: v7x
topology: tpu7x:2x2x1
jax: 0.10.0
libtpu: 0.0.40
codegen_flags: <defaults>
</compile_context>

<pallas_src>
import functools

import jax
import jax.numpy as jnp
from jax.experimental import pallas as pl
from jax.experimental.pallas import tpu as pltpu


def _ipow(x, n):
    """x ** n for a static positive integer n via repeated multiplies (pure VPU)."""
    acc = None
    base = x
    e = int(n)
    while e:
        if e & 1:
            acc = base if acc is None else acc * base
        e >>= 1
        if e:
            base = base * base
    return acc


def _is_int_fast_path(static_p):
    return (static_p is not None
            and float(static_p) == round(static_p)
            and 1 <= round(static_p) <= 64)


def _pow_p(x, p, static_p):
    """x ** p for x > 0.  Static integer p -> VPU multiplies; else exp(p*log(x))."""
    if _is_int_fast_path(static_p):
        return _ipow(x, int(round(static_p)))
    if static_p is not None:
        p = jnp.float32(static_p)
    return jnp.exp(p * jnp.log(x))


def _root_p(m, p, static_p):
    """m ** (1/p) for m > 0 (per-row only, so transcendentals here are negligible)."""
    if static_p is not None:
        return jnp.exp(jnp.log(m) * jnp.float32(1.0 / float(static_p)))
    return jnp.exp(jnp.log(m) / p)


# ---------------------------------------------------------------------------
# Kernel 1: whole H*W fits in one block -> single reduction step per row tile.
# ---------------------------------------------------------------------------
def _gem_kernel_1step(*refs, static_p, eps, inv_hw):
    if static_p is None:
        p_ref, x_ref, o_ref = refs
        p = p_ref[0]
    else:
        x_ref, o_ref = refs
        p = None
    x = jnp.maximum(x_ref[...].astype(jnp.float32), jnp.float32(eps))  # clamp(min=eps)
    xp = _pow_p(x, p, static_p)
    m = jnp.sum(xp, axis=-1, keepdims=True) * jnp.float32(inv_hw)      # mean over H*W
    o_ref[...] = _root_p(m, p, static_p).astype(o_ref.dtype)


# ---------------------------------------------------------------------------
# Kernel 2: huge H*W -> reduction axis split into 128-aligned chunks (grid axis 1,
# "arbitrary") with a lane-wise (tile_r, 128) f32 accumulator in VMEM.
# ---------------------------------------------------------------------------
def _gem_kernel_multik(*refs, static_p, eps, inv_hw, hw, tile_hw, needs_mask):
    if static_p is None:
        p_ref, x_ref, o_ref, acc_ref = refs
        p = p_ref[0]
    else:
        x_ref, o_ref, acc_ref = refs
        p = None
    k = pl.program_id(1)

    @pl.when(k == 0)
    def _init():
        acc_ref[...] = jnp.zeros_like(acc_ref)

    x = jnp.maximum(x_ref[...].astype(jnp.float32), jnp.float32(eps))
    xp = _pow_p(x, p, static_p)

    if needs_mask:
        # Ragged H*W tail: out-of-bounds lanes hold undefined data -> zero them out.
        col = k * tile_hw + jax.lax.broadcasted_iota(jnp.int32, xp.shape, 1)
        xp = jnp.where(col < hw, xp, jnp.float32(0.0))

    # Lane-wise partial sums: tree of VALU adds over 128-wide static lane slices
    # (no per-step XLU cross-lane reduce, no 1-lane read-modify-write).
    n_blocks = tile_hw // 128
    parts = [xp[:, j * 128:(j + 1) * 128] for j in range(n_blocks)]
    while len(parts) > 1:
        nxt = [parts[a] + parts[a + 1] for a in range(0, len(parts) - 1, 2)]
        if len(parts) % 2:
            nxt.append(parts[-1])
        parts = nxt
    acc_ref[...] += parts[0]

    @pl.when(k == pl.num_programs(1) - 1)
    def _finalize():
        m = jnp.sum(acc_ref[...], axis=-1, keepdims=True) * jnp.float32(inv_hw)
        o_ref[...] = _root_p(m, p, static_p).astype(o_ref.dtype)


# ---------------------------------------------------------------------------
# Wrapper
# ---------------------------------------------------------------------------
def gem_pallas(x, p=3.0, eps=1e-06, *, vmem_block_bytes=4 * 1024 * 1024):
    """GeM pooling.

    x: (N, C, H, W).
    p: Python number (frozen / inference fast path) OR shape-(1,) array (learnable).
    Returns (N, C, 1, 1) in x.dtype.
    """
    N, C, H, W = x.shape
    rows, hw = N * C, H * W
    x2 = x.reshape(rows, hw)
    dsize = x2.dtype.itemsize
    pack = {4: 8, 2: 16, 1: 32}.get(dsize, 8)   # sublane packing per dtype

    # p: static fast path vs. learnable SMEM scalar.
    static_p = None
    extra_args = []
    in_specs_prefix = []
    if isinstance(p, (int, float)):
        static_p = float(p)
    else:
        p_arr = jnp.asarray(p).reshape((1,)).astype(jnp.float32)
        extra_args.append(p_arr)
        in_specs_prefix.append(pl.BlockSpec(memory_space=pltpu.SMEM))

    int_fast = _is_int_fast_path(static_p)
    trans = 2 * rows if int_fast else 2 * rows * hw + 2 * rows
    cost = pl.CostEstimate(flops=4 * rows * hw,
                           transcendentals=trans,
                           bytes_accessed=rows * hw * dsize + rows * dsize)

    row_bytes = hw * dsize
    if pack * row_bytes <= vmem_block_bytes:
        # -------- common case: whole H*W in one block, no scratch --------
        tile_hw = hw
        max_r_vmem = max(pack, (vmem_block_bytes // row_bytes) // pack * pack)
        # Target ~8 row tiles when rows allow: keeps the DMA pipeline fed and both
        # v7x TensorCores busy, without shrinking tiles below useful size.
        tile_r_balance = max(pack, pl.cdiv(pl.cdiv(rows, 8), pack) * pack)
        tile_r = min(max_r_vmem, tile_r_balance, pl.cdiv(rows, pack) * pack)
        grid = (pl.cdiv(rows, tile_r),)

        kernel = functools.partial(_gem_kernel_1step, static_p=static_p,
                                   eps=float(eps), inv_hw=1.0 / float(hw))
        out = pl.pallas_call(
            kernel,
            out_shape=jax.ShapeDtypeStruct((rows, 1), x.dtype),
            grid=grid,
            in_specs=in_specs_prefix + [
                pl.BlockSpec((tile_r, tile_hw), lambda i: (i, 0)),
            ],
            out_specs=pl.BlockSpec((tile_r, 1), lambda i: (i, 0)),
            compiler_params=pltpu.CompilerParams(
                dimension_semantics=("parallel",)),
            cost_estimate=cost,
        )(*extra_args, x2)
    else:
        # -------- huge feature maps: chunk the reduction axis --------
        tile_r = pack
        tile_hw = max(128, (vmem_block_bytes // (tile_r * dsize)) // 128 * 128)
        tile_hw = min(tile_hw, pl.cdiv(hw, 128) * 128)
        grid = (pl.cdiv(rows, tile_r), pl.cdiv(hw, tile_hw))
        needs_mask = (hw % tile_hw) != 0

        kernel = functools.partial(_gem_kernel_multik, static_p=static_p,
                                   eps=float(eps), inv_hw=1.0 / float(hw),
                                   hw=hw, tile_hw=tile_hw, needs_mask=needs_mask)
        out = pl.pallas_call(
            kernel,
            out_shape=jax.ShapeDtypeStruct((rows, 1), x.dtype),
            grid=grid,
            in_specs=in_specs_prefix + [
                pl.BlockSpec((tile_r, tile_hw), lambda i, k: (i, k)),
            ],
            out_specs=pl.BlockSpec((tile_r, 1), lambda i, k: (i, 0)),
            scratch_shapes=[pltpu.VMEM((tile_r, 128), jnp.float32)],
            compiler_params=pltpu.CompilerParams(
                dimension_semantics=("parallel", "arbitrary")),
            cost_estimate=cost,
        )(*extra_args, x2)

    return out.reshape(N, C, 1, 1)


def gem_reference(x, p, eps=1e-06):
    pv = jnp.float32(p) if isinstance(p, (int, float)) else jnp.asarray(p).reshape(()).astype(jnp.float32)
    xc = jnp.maximum(x.astype(jnp.float32), eps)
    m = jnp.mean(xc ** pv, axis=(-2, -1), keepdims=True)
    return (m ** (1.0 / pv)).astype(x.dtype)


if __name__ == "__main__":
    key = jax.random.PRNGKey(0)
    k1, k2, k3 = jax.random.split(key, 3)

    # 1) Module default: frozen p = 3 -> static integer fast path (pure VPU pow).
    x = jax.random.normal(k1, (2, 4, 16, 16), dtype=jnp.float32)
    y = gem_pallas(x, 3.0, eps=1e-06)
    jax.block_until_ready(y)
    assert y.shape == (2, 4, 1, 1), y.shape
    assert jnp.allclose(y, gem_reference(x, 3.0), atol=1e-5, rtol=1e-5)

    # 2) Learnable p (GeM.__init__: p = ones(1) * 3) passed as an array -> SMEM
    #    scalar + exp(p*log(x)) path; also a non-integer value.
    p_learn = jnp.ones((1,), dtype=jnp.float32) * 2.5
    y2 = gem_pallas(x, p_learn, eps=1e-06)
    jax.block_until_ready(y2)
    assert jnp.allclose(y2, gem_reference(x, p_learn), atol=1e-5, rtol=1e-5)

    # 3) Chunked-H*W path with a ragged tail and ragged row tiles (tiny VMEM block
    #    budget used only to force this code path at small test shapes).
    x3 = jax.random.normal(k2, (3, 3, 18, 18), dtype=jnp.float32)  # rows=9, hw=324
    y3 = gem_pallas(x3, 3.0, eps=1e-06, vmem_block_bytes=2048)
    jax.block_until_ready(y3)
    assert y3.shape == (3, 3, 1, 1), y3.shape
    assert jnp.allclose(y3, gem_reference(x3, 3.0), atol=1e-5, rtol=1e-5)

    print("KERNEL_OK")
</pallas_src>

<mosaic_0001>
module attributes {stable_mosaic.version = 11 : i64} {
  func.func @_gem_kernel_1step(%arg0: i32, %arg1: memref<8x256xf32, #tpu.memory_space<vmem>>, %arg2: memref<8x1xf32, #tpu.memory_space<vmem>>) attributes {dimension_semantics = [#tpu.dimension_semantics<parallel>], iteration_bounds = array<i64: 1>, scalar_prefetch = 0 : i64, scratch_operands = 0 : i64, tpu.core_type = #tpu.core_type<tc>, window_params = [{transform_indices = @transform_0, window_bounds = array<i64: 8, 256>}, {transform_indices = @transform_1, window_bounds = array<i64: 8, 1>}]} {
    %c0 = arith.constant 0 : index
    %c0_0 = arith.constant 0 : index
    %0 = vector.load %arg1[%c0, %c0_0] : memref<8x256xf32, #tpu.memory_space<vmem>>, vector<8x256xf32>
    %cst = arith.constant 9.99999997E-7 : f32
    %1 = vector.broadcast %cst : f32 to vector<8x256xf32>
    %2 = arith.maximumf %0, %1 : vector<8x256xf32>
    %3 = arith.mulf %2, %2 : vector<8x256xf32>
    %4 = arith.mulf %2, %3 : vector<8x256xf32>
    %cst_1 = arith.constant dense<0.000000e+00> : vector<8xf32>
    %5 = vector.multi_reduction <add>, %4, %cst_1 [1] : vector<8x256xf32> to vector<8xf32>
    %6 = vector.shape_cast %5 : vector<8xf32> to vector<8x1xf32>
    %cst_2 = arith.constant 3.906250e-03 : f32
    %7 = vector.broadcast %cst_2 : f32 to vector<8x1xf32>
    %8 = arith.mulf %6, %7 : vector<8x1xf32>
    %9 = math.log %8 : vector<8x1xf32>
    %cst_3 = arith.constant 0.333333343 : f32
    %10 = vector.broadcast %cst_3 : f32 to vector<8x1xf32>
    %11 = arith.mulf %9, %10 : vector<8x1xf32>
    %12 = math.exp %11 : vector<8x1xf32>
    %c0_4 = arith.constant 0 : index
    %c0_5 = arith.constant 0 : index
    %13 = vector.load %arg2[%c0_4, %c0_5] : memref<8x1xf32, #tpu.memory_space<vmem>>, vector<8x1xf32>
    tpu.vector_store %arg2[%c0_4, %c0_5], %12 {strides = array<i32>} : memref<8x1xf32, #tpu.memory_space<vmem>>, vector<8x1xf32>,
    return
  }
  func.func @transform_0(%arg0: i32) -> (i32, i32) {
    %c0_i32 = arith.constant 0 : i32
    %c0_i32_0 = arith.constant 0 : i32
    return %arg0, %c0_i32 : i32, i32
  }
  func.func @transform_1(%arg0: i32) -> (i32, i32) {
    %c0_i32 = arith.constant 0 : i32
    %c0_i32_0 = arith.constant 0 : i32
    return %arg0, %c0_i32 : i32, i32
  }
}

</mosaic_0001>

<bundles_post_ra>
// kernel: tpu_custom_call.1
= control target key start
LH: loop header
LB: loop body
LE: loop exit
PB: predicated region body
PF: predicated region fallthrough
CT: control target
= control target key end

     0   :  { %6 = vsyncpa [#allocation3], 0  ;;  %s73_s6 = smov [#allocation2]   ;;  %s99_s0 = inlined_call_operand.hbm [shape: f32[8,256], index: 0, kind: input, shape index: {}]   ;;  %s100_s1 = inlined_call_operand.vmem [shape: f32[8,1], index: 1, kind: output, shape index: {}]  }
   0x1   :  { %s13_s7 = sshll.u32 %s73_s6, 4  ;;  %s49_s10 = scalar_lea.hbm %s99_s0, 256  ;;  %s14_s7 = int_to_ptr.vmem [resolvable:$true] %s13_s7 }
   0x2   :  { %p50_p0 = scmp.ne.s32.totalorder %s99_s0, %s49_s10  ;;  %p53_p1 = scmp.lt.u32.totalorder %s49_s10, %s99_s0 }
   0x4   :  { %p55_p2 = pnand %p53_p1, %p50_p0 }
   0x6   :  { %58 = shalt.err (!%p55_p2)
}
   0x7   :  { %s59_s15 = scalar_lea.vmem %s14_s7, 256  ;;  %p64_p4 = scmp.lt.s32.totalorder %s14_s7, %s14_s7 }
   0x8   :  { %p60_p3 = scmp.ne.s32.totalorder %s14_s7, %s59_s15  ;;  %p65_p5 = scmp.lt.s32.totalorder %s59_s15, %s59_s15 }
   0xa   :  { %p66_p6 = por %p65_p5, %p64_p4 }
   0xc   :  { %p67_p7 = pnand %p66_p6, %p60_p3 }
   0xe   :  { %70 = shalt.err (!%p67_p7)
}
   0xf   :  { %16 = dma.hbm_to_vmem [thread:$0]  %s99_s0, 256, %s14_s7, [#allocation3]  }
  0x10   :  { %71 = dma.done.wait [#allocation3], 256  }
  0x11   :  { %72 = vsyncadd [#allocation3], 4294967040  ;;  %v20_v0 = vld [vmem:[#allocation2] sm:$0xff]  ;;  %v21_v1 = vld [vmem:[#allocation2 + $0x8] sm:$0xff]  ;;  %vm37_vm0 = vcmask 7168  }
  0x12   :  { %v22_v2 = vmax.f32 %v20_v0, 1e-06  ;;  %v23_v3 = vmax.f32 %v21_v1, 1e-06 }
  0x14   :  { %v24_v4 = vmul.f32 %v22_v2, %v22_v2  ;;  %v25_v5 = vmul.f32 %v23_v3, %v23_v3 }
  0x16   :  { %v26_v6 = vmul.f32 %v24_v4, %v22_v2  ;;  %v27_v7 = vmul.f32 %v25_v5, %v23_v3 }
  0x18   :  { %v28_v8 = vadd.f32 %v27_v7, %v26_v6 }
  0x1a   :  { %29 = vadd.xlane.f32.xlu0 %v28_v8 }
  0xa7   :  { %v30_v9 = vpop.xlane.xlu0 %29 }
  0xa8   :  { %v31_v10 = vmul.f32 0.00390625, %v30_v9 }
  0xaa   :  { %45 = vlog2.f32 %v31_v10 }
  0xb4   :  { %v46_v11 = vpop.eup %45 }
  0xb5   :  { %v33_v12 = vmul.f32 0.6931472, %v46_v11 }
  0xb7   :  { %v34_v13 = vmul.f32 0.33333334, %v33_v12 }
  0xb9   :  { %v35_v14 = vmul.f32 1.442695, %v34_v13 }
  0xbb   :  { %47 = vpow2.f32 %v35_v14 }
  0xc5   :  { %v48_v15 = vpop.eup %47 }
  0xc6   :  { %38 = vst.msk [vmem:[%s100_s1] sm:$0xff] %vm37_vm0, %v48_v15 }
  0xc7   :  { %43 = vsyncpa [#allocation3], 1 }

</bundles_post_ra>
